<compile_context>
chip_gen: v7x
topology: tpu7x:2x2x1
jax: 0.10.0
libtpu: 0.0.40
codegen_flags: <defaults>
</compile_context>

<pallas_src>
import jax
import jax.numpy as jnp
from jax.experimental import pallas as pl
from jax.experimental.pallas import tpu as pltpu


def _round_up(x, m):
    return ((x + m - 1) // m) * m


def _lane_padded_bytes(rows, cols, itemsize=4):
    # VMEM footprint of a (rows, cols) tile after (sublane, lane) padding.
    return _round_up(max(rows, 1), 8) * _round_up(max(cols, 1), 128) * itemsize


def _mixture_to_dirichlet_kernel(x_ref, w1_ref, b1_ref, w2_ref, b2_ref, out_ref):
    # fc1: single fused MXU pass over the concatenated [TN, C+F] tile.
    h = jnp.dot(x_ref[...], w1_ref[...], preferred_element_type=jnp.float32)
    h = jnp.maximum(h + b1_ref[...], 0.0)                          # [TN, H] f32

    # fc2 (cast back to the matmul dtype only for the MXU; math stays f32).
    y = jnp.dot(h.astype(w2_ref.dtype), w2_ref[...],
                preferred_element_type=jnp.float32) + b2_ref[...]  # [TN, C*F]

    # numerically stable softplus: max(y, 0) + log1p(exp(-|y|))  (2 EUP ops/elem)
    sp = jnp.maximum(y, 0.0) + jnp.log1p(jnp.exp(-jnp.abs(y)))
    out_ref[...] = (sp + 0.001).astype(out_ref.dtype)


def _build_pallas_call(n_pad, TN, in_dim, H, out_dim,
                       single_buffer_weights, vmem_limit, cost):
    # Constant-index weights/biases only DMA once; request 1 pipeline buffer.
    wkw = dict(pipeline_mode=pl.Buffered(1)) if single_buffer_weights else {}
    return pl.pallas_call(
        _mixture_to_dirichlet_kernel,
        out_shape=jax.ShapeDtypeStruct((n_pad, out_dim), jnp.float32),
        grid=(n_pad // TN,),
        in_specs=[
            pl.BlockSpec((TN, in_dim), lambda i: (i, 0)),            # x tile
            pl.BlockSpec((in_dim, H), lambda i: (0, 0), **wkw),      # w1 (resident)
            pl.BlockSpec((1, H), lambda i: (0, 0), **wkw),           # b1 (resident)
            pl.BlockSpec((H, out_dim), lambda i: (0, 0), **wkw),     # w2 (resident)
            pl.BlockSpec((1, out_dim), lambda i: (0, 0), **wkw),     # b2 (resident)
        ],
        out_specs=pl.BlockSpec((TN, out_dim), lambda i: (i, 0)),
        compiler_params=pltpu.CompilerParams(
            dimension_semantics=("parallel",),
            vmem_limit_bytes=vmem_limit,
        ),
        cost_estimate=cost,
    )


def mixture_to_dirichlet_forward(pi, X, w1, b1, w2, b2,
                                 num_components, num_features,
                                 matmul_dtype=jnp.float32):
    """pi: [n, C], X: [n, F]  ->  alpha: [n, C, F]

    matmul_dtype=jnp.bfloat16 halves weight DMA / resident VMEM and speeds up
    the MXU on v6e/v7x (f32 accumulation, f32 element-wise math) at the cost
    of looser numerics; default f32 preserves 1e-5 agreement.
    """
    n, C = pi.shape
    F = X.shape[1]
    in_dim = C + F
    H = w1.shape[1]
    out_dim = w2.shape[1]                      # == C * F
    itemsize = jnp.dtype(matmul_dtype).itemsize

    # Cheap wrapper-side concat (input HBM traffic << output traffic) so fc1
    # is a single fused dot inside the kernel.
    x = jnp.concatenate([pi, X], axis=1).astype(matmul_dtype)       # [n, C+F]
    w1c = w1.astype(matmul_dtype)
    w2c = w2.astype(matmul_dtype)
    b1_2d = b1.astype(jnp.float32).reshape(1, H)
    b2_2d = b2.astype(jnp.float32).reshape(1, out_dim)

    # ---- batch tiling: scale TN with VMEM headroom; keep >= 2 grid steps so
    # v7x can shard the batch axis over its 2 TensorCores. ----
    sub = 8 * max(1, 4 // itemsize)            # sublane multiple for the dtype
    n_sub = _round_up(n, sub)
    TN = min(2048, n_sub)
    if n_sub >= 2 * sub:
        TN = min(TN, _round_up(pl.cdiv(n_sub, 2), sub))
    n_pad = _round_up(n_sub, TN)
    if n_pad != n:
        x = jnp.pad(x, ((0, n_pad - n), (0, 0)))

    # ---- VMEM budget: lane-padded tiles, double-buffered activations,
    # single-buffered resident weights, plus in-kernel intermediates. ----
    vmem_bytes = (
        2 * _lane_padded_bytes(TN, in_dim, itemsize)     # x tile (x2 buffers)
        + 2 * _lane_padded_bytes(TN, out_dim)            # out tile (x2 buffers)
        + _lane_padded_bytes(in_dim, H, itemsize)        # w1
        + _lane_padded_bytes(1, H)                       # b1
        + _lane_padded_bytes(H, out_dim, itemsize)       # w2
        + _lane_padded_bytes(1, out_dim)                 # b2
        + _lane_padded_bytes(TN, H)                      # hidden intermediate
        + _lane_padded_bytes(TN, out_dim)                # softplus temp
    )
    # Cap below 48 MiB so v7x (64 MiB per-TC VMEM) keeps compiler headroom.
    vmem_limit = int(min(max(2 * vmem_bytes, 32 << 20), 48 << 20))

    cost = pl.CostEstimate(
        flops=2 * n_pad * (in_dim * H + H * out_dim),
        transcendentals=2 * n_pad * out_dim,             # exp + log1p
        bytes_accessed=(itemsize * (n_pad * in_dim + in_dim * H + H * out_dim)
                        + 4 * (H + out_dim + n_pad * out_dim)),
    )

    def run(single_buffer_weights):
        call = _build_pallas_call(n_pad, TN, in_dim, H, out_dim,
                                  single_buffer_weights, vmem_limit, cost)
        return call(x, w1c, b1_2d, w2c, b2_2d)

    try:
        out = run(True)
    except Exception:
        # Fallback for jax versions without BlockSpec(pipeline_mode=...).
        out = run(False)

    # Output is written at its true lane width (C*F), so the only post-kernel
    # work is an (optional) row strip when n % TN != 0 plus a layout-preserving
    # reshape -- no padded->unpadded copy pass.
    if n_pad != n:
        out = out[:n]
    return out.reshape(n, num_components, num_features)


def init_params(key, num_components, num_features, hidden_dim):
    """Deterministic init mimicking nn.Linear defaults (uniform +/- 1/sqrt(fan_in)).
    Weights are stored as [in_dim, out_dim] (i.e. W.T relative to PyTorch)."""
    in1 = num_components + num_features
    out2 = num_components * num_features
    k1, k2, k3, k4 = jax.random.split(key, 4)
    bnd1 = 1.0 / jnp.sqrt(in1)
    bnd2 = 1.0 / jnp.sqrt(hidden_dim)
    w1 = jax.random.uniform(k1, (in1, hidden_dim), jnp.float32, -bnd1, bnd1)
    b1 = jax.random.uniform(k2, (hidden_dim,), jnp.float32, -bnd1, bnd1)
    w2 = jax.random.uniform(k3, (hidden_dim, out2), jnp.float32, -bnd2, bnd2)
    b2 = jax.random.uniform(k4, (out2,), jnp.float32, -bnd2, bnd2)
    return w1, b1, w2, b2


if __name__ == "__main__":
    # small shapes consistent with the module (n=16 -> 2 grid steps on v7x)
    n, C, F, H = 16, 4, 12, 32

    key = jax.random.PRNGKey(0)
    kp, kx, kw = jax.random.split(key, 3)

    # mixture weights (rows sum to 1) and non-negative "expression" features
    pi = jax.nn.softmax(jax.random.normal(kp, (n, C), jnp.float32), axis=1)
    X = jnp.abs(jax.random.normal(kx, (n, F), jnp.float32))

    w1, b1, w2, b2 = init_params(kw, C, F, H)

    alpha = mixture_to_dirichlet_forward(pi, X, w1, b1, w2, b2, C, F)
    alpha = jax.block_until_ready(alpha)

    # pure-JAX reference
    x_cat = jnp.concatenate([pi, X], axis=1)
    h_ref = jnp.maximum(x_cat @ w1 + b1, 0.0)
    alpha_ref = (jax.nn.softplus(h_ref @ w2 + b2) + 0.001).reshape(n, C, F)

    assert alpha.shape == (n, C, F), alpha.shape
    assert bool(jnp.all(alpha > 0.0))
    assert jnp.allclose(alpha, alpha_ref, atol=1e-5, rtol=1e-5), \
        float(jnp.max(jnp.abs(alpha - alpha_ref)))

    print("KERNEL_OK")
</pallas_src>

<mosaic_0001>
module attributes {stable_mosaic.version = 11 : i64} {
  func.func @_mixture_to_dirichlet_kernel(%arg0: i32, %arg1: memref<8x16xf32, #tpu.memory_space<vmem>>, %arg2: memref<16x32xf32, #tpu.memory_space<vmem>>, %arg3: memref<1x32xf32, #tpu.memory_space<vmem>>, %arg4: memref<32x48xf32, #tpu.memory_space<vmem>>, %arg5: memref<1x48xf32, #tpu.memory_space<vmem>>, %arg6: memref<8x48xf32, #tpu.memory_space<vmem>>) attributes {dimension_semantics = [#tpu.dimension_semantics<parallel>], iteration_bounds = array<i64: 2>, scalar_prefetch = 0 : i64, scratch_operands = 0 : i64, tpu.core_type = #tpu.core_type<tc>, window_params = [{transform_indices = @transform_0, window_bounds = array<i64: 8, 16>}, {pipeline_mode = #tpu.pipeline_mode<synchronous>, transform_indices = @transform_1, window_bounds = array<i64: 16, 32>}, {pipeline_mode = #tpu.pipeline_mode<synchronous>, transform_indices = @transform_2, window_bounds = array<i64: 1, 32>}, {pipeline_mode = #tpu.pipeline_mode<synchronous>, transform_indices = @transform_3, window_bounds = array<i64: 32, 48>}, {pipeline_mode = #tpu.pipeline_mode<synchronous>, transform_indices = @transform_4, window_bounds = array<i64: 1, 48>}, {transform_indices = @transform_5, window_bounds = array<i64: 8, 48>}]} {
    %c0 = arith.constant 0 : index
    %c0_0 = arith.constant 0 : index
    %0 = vector.load %arg1[%c0, %c0_0] : memref<8x16xf32, #tpu.memory_space<vmem>>, vector<8x16xf32>
    %c0_1 = arith.constant 0 : index
    %c0_2 = arith.constant 0 : index
    %1 = vector.load %arg2[%c0_1, %c0_2] : memref<16x32xf32, #tpu.memory_space<vmem>>, vector<16x32xf32>
    %cst = arith.constant dense<0.000000e+00> : vector<8x32xf32>
    %2 = tpu.matmul %0, %1, %cst {dimension_numbers = #tpu.dot_dimension_numbers<[1], [0], [0], [1], [0, 0, 1, 1], [], []>} : vector<8x16xf32>, vector<16x32xf32>, vector<8x32xf32> -> vector<8x32xf32>
    %c0_3 = arith.constant 0 : index
    %c0_4 = arith.constant 0 : index
    %3 = vector.load %arg3[%c0_3, %c0_4] : memref<1x32xf32, #tpu.memory_space<vmem>>, vector<1x32xf32>
    %4 = vector.broadcast %3 : vector<1x32xf32> to vector<8x32xf32>
    %5 = arith.addf %2, %4 : vector<8x32xf32>
    %cst_5 = arith.constant 0.000000e+00 : f32
    %6 = vector.broadcast %cst_5 : f32 to vector<8x32xf32>
    %7 = arith.maximumf %5, %6 : vector<8x32xf32>
    %c0_6 = arith.constant 0 : index
    %c0_7 = arith.constant 0 : index
    %8 = vector.load %arg4[%c0_6, %c0_7] : memref<32x48xf32, #tpu.memory_space<vmem>>, vector<32x48xf32>
    %cst_8 = arith.constant dense<0.000000e+00> : vector<8x48xf32>
    %9 = tpu.matmul %7, %8, %cst_8 {dimension_numbers = #tpu.dot_dimension_numbers<[1], [0], [0], [1], [0, 0, 1, 1], [], []>} : vector<8x32xf32>, vector<32x48xf32>, vector<8x48xf32> -> vector<8x48xf32>
    %c0_9 = arith.constant 0 : index
    %c0_10 = arith.constant 0 : index
    %10 = vector.load %arg5[%c0_9, %c0_10] : memref<1x48xf32, #tpu.memory_space<vmem>>, vector<1x48xf32>
    %11 = vector.broadcast %10 : vector<1x48xf32> to vector<8x48xf32>
    %12 = arith.addf %9, %11 : vector<8x48xf32>
    %cst_11 = arith.constant 0.000000e+00 : f32
    %13 = vector.broadcast %cst_11 : f32 to vector<8x48xf32>
    %14 = arith.maximumf %12, %13 : vector<8x48xf32>
    %15 = math.absf %12 : vector<8x48xf32>
    %cst_12 = arith.constant 0.000000e+00 : f32
    %16 = vector.broadcast %cst_12 : f32 to vector<8x48xf32>
    %17 = arith.subf %16, %15 : vector<8x48xf32>
    %18 = math.exp %17 : vector<8x48xf32>
    %19 = math.log1p %18 : vector<8x48xf32>
    %20 = arith.addf %14, %19 : vector<8x48xf32>
    %cst_13 = arith.constant 1.000000e-03 : f32
    %21 = vector.broadcast %cst_13 : f32 to vector<8x48xf32>
    %22 = arith.addf %20, %21 : vector<8x48xf32>
    %c0_14 = arith.constant 0 : index
    %c0_15 = arith.constant 0 : index
    %23 = vector.load %arg6[%c0_14, %c0_15] : memref<8x48xf32, #tpu.memory_space<vmem>>, vector<8x48xf32>
    tpu.vector_store %arg6[%c0_14, %c0_15], %22 {strides = array<i32>} : memref<8x48xf32, #tpu.memory_space<vmem>>, vector<8x48xf32>,
    return
  }
  func.func @transform_0(%arg0: i32) -> (i32, i32) {
    %c0_i32 = arith.constant 0 : i32
    %c0_i32_0 = arith.constant 0 : i32
    return %arg0, %c0_i32 : i32, i32
  }
  func.func @transform_1(%arg0: i32) -> (i32, i32) {
    %c0_i32 = arith.constant 0 : i32
    %c0_i32_0 = arith.constant 0 : i32
    %c0_i32_1 = arith.constant 0 : i32
    return %c0_i32, %c0_i32_0 : i32, i32
  }
  func.func @transform_2(%arg0: i32) -> (i32, i32) {
    %c0_i32 = arith.constant 0 : i32
    %c0_i32_0 = arith.constant 0 : i32
    %c0_i32_1 = arith.constant 0 : i32
    return %c0_i32, %c0_i32_0 : i32, i32
  }
  func.func @transform_3(%arg0: i32) -> (i32, i32) {
    %c0_i32 = arith.constant 0 : i32
    %c0_i32_0 = arith.constant 0 : i32
    %c0_i32_1 = arith.constant 0 : i32
    return %c0_i32, %c0_i32_0 : i32, i32
  }
  func.func @transform_4(%arg0: i32) -> (i32, i32) {
    %c0_i32 = arith.constant 0 : i32
    %c0_i32_0 = arith.constant 0 : i32
    %c0_i32_1 = arith.constant 0 : i32
    return %c0_i32, %c0_i32_0 : i32, i32
  }
  func.func @transform_5(%arg0: i32) -> (i32, i32) {
    %c0_i32 = arith.constant 0 : i32
    %c0_i32_0 = arith.constant 0 : i32
    return %arg0, %c0_i32 : i32, i32
  }
}

module attributes {stable_mosaic.version = 11 : i64} {
  func.func @_mixture_to_dirichlet_kernel(%arg0: i32, %arg1: memref<8x16xf32, #tpu.memory_space<vmem>>, %arg2: memref<16x32xf32, #tpu.memory_space<vmem>>, %arg3: memref<1x32xf32, #tpu.memory_space<vmem>>, %arg4: memref<32x48xf32, #tpu.memory_space<vmem>>, %arg5: memref<1x48xf32, #tpu.memory_space<vmem>>, %arg6: memref<8x48xf32, #tpu.memory_space<vmem>>) attributes {dimension_semantics = [#tpu.dimension_semantics<parallel>], iteration_bounds = array<i64: 2>, scalar_prefetch = 0 : i64, scratch_operands = 0 : i64, tpu.core_type = #tpu.core_type<tc>, window_params = [{transform_indices = @transform_0, window_bounds = array<i64: 8, 16>}, {pipeline_mode = #tpu.pipeline_mode<synchronous>, transform_indices = @transform_1, window_bounds = array<i64: 16, 32>}, {pipeline_mode = #tpu.pipeline_mode<synchronous>, transform_indices = @transform_2, window_bounds = array<i64: 1, 32>}, {pipeline_mode = #tpu.pipeline_mode<synchronous>, transform_indices = @transform_3, window_bounds = array<i64: 32, 48>}, {pipeline_mode = #tpu.pipeline_mode<synchronous>, transform_indices = @transform_4, window_bounds = array<i64: 1, 48>}, {transform_indices = @transform_5, window_bounds = array<i64: 8, 48>}]} {
    %c0 = arith.constant 0 : index
    %c0_0 = arith.constant 0 : index
    %0 = vector.load %arg1[%c0, %c0_0] : memref<8x16xf32, #tpu.memory_space<vmem>>, vector<8x16xf32>
    %c0_1 = arith.constant 0 : index
    %c0_2 = arith.constant 0 : index
    %1 = vector.load %arg2[%c0_1, %c0_2] : memref<16x32xf32, #tpu.memory_space<vmem>>, vector<16x32xf32>
    %cst = arith.constant dense<0.000000e+00> : vector<8x32xf32>
    %2 = tpu.matmul %0, %1, %cst {dimension_numbers = #tpu.dot_dimension_numbers<[1], [0], [0], [1], [0, 0, 1, 1], [], []>} : vector<8x16xf32>, vector<16x32xf32>, vector<8x32xf32> -> vector<8x32xf32>
    %c0_3 = arith.constant 0 : index
    %c0_4 = arith.constant 0 : index
    %3 = vector.load %arg3[%c0_3, %c0_4] : memref<1x32xf32, #tpu.memory_space<vmem>>, vector<1x32xf32>
    %4 = vector.broadcast %3 : vector<1x32xf32> to vector<8x32xf32>
    %5 = arith.addf %2, %4 : vector<8x32xf32>
    %cst_5 = arith.constant 0.000000e+00 : f32
    %6 = vector.broadcast %cst_5 : f32 to vector<8x32xf32>
    %7 = arith.maximumf %5, %6 : vector<8x32xf32>
    %c0_6 = arith.constant 0 : index
    %c0_7 = arith.constant 0 : index
    %8 = vector.load %arg4[%c0_6, %c0_7] : memref<32x48xf32, #tpu.memory_space<vmem>>, vector<32x48xf32>
    %cst_8 = arith.constant dense<0.000000e+00> : vector<8x48xf32>
    %9 = tpu.matmul %7, %8, %cst_8 {dimension_numbers = #tpu.dot_dimension_numbers<[1], [0], [0], [1], [0, 0, 1, 1], [], []>} : vector<8x32xf32>, vector<32x48xf32>, vector<8x48xf32> -> vector<8x48xf32>
    %c0_9 = arith.constant 0 : index
    %c0_10 = arith.constant 0 : index
    %10 = vector.load %arg5[%c0_9, %c0_10] : memref<1x48xf32, #tpu.memory_space<vmem>>, vector<1x48xf32>
    %11 = vector.broadcast %10 : vector<1x48xf32> to vector<8x48xf32>
    %12 = arith.addf %9, %11 : vector<8x48xf32>
    %cst_11 = arith.constant 0.000000e+00 : f32
    %13 = vector.broadcast %cst_11 : f32 to vector<8x48xf32>
    %14 = arith.maximumf %12, %13 : vector<8x48xf32>
    %15 = math.absf %12 : vector<8x48xf32>
    %cst_12 = arith.constant 0.000000e+00 : f32
    %16 = vector.broadcast %cst_12 : f32 to vector<8x48xf32>
    %17 = arith.subf %16, %15 : vector<8x48xf32>
    %18 = math.exp %17 : vector<8x48xf32>
    %19 = math.log1p %18 : vector<8x48xf32>
    %20 = arith.addf %14, %19 : vector<8x48xf32>
    %cst_13 = arith.constant 1.000000e-03 : f32
    %21 = vector.broadcast %cst_13 : f32 to vector<8x48xf32>
    %22 = arith.addf %20, %21 : vector<8x48xf32>
    %c0_14 = arith.constant 0 : index
    %c0_15 = arith.constant 0 : index
    %23 = vector.load %arg6[%c0_14, %c0_15] : memref<8x48xf32, #tpu.memory_space<vmem>>, vector<8x48xf32>
    tpu.vector_store %arg6[%c0_14, %c0_15], %22 {strides = array<i32>} : memref<8x48xf32, #tpu.memory_space<vmem>>, vector<8x48xf32>,
    return
  }
  func.func @transform_0(%arg0: i32) -> (i32, i32) {
    %c0_i32 = arith.constant 0 : i32
    %c0_i32_0 = arith.constant 0 : i32
    return %arg0, %c0_i32 : i32, i32
  }
  func.func @transform_1(%arg0: i32) -> (i32, i32) {
    %c0_i32 = arith.constant 0 : i32
    %c0_i32_0 = arith.constant 0 : i32
    %c0_i32_1 = arith.constant 0 : i32
    return %c0_i32, %c0_i32_0 : i32, i32
  }
  func.func @transform_2(%arg0: i32) -> (i32, i32) {
    %c0_i32 = arith.constant 0 : i32
    %c0_i32_0 = arith.constant 0 : i32
    %c0_i32_1 = arith.constant 0 : i32
    return %c0_i32, %c0_i32_0 : i32, i32
  }
  func.func @transform_3(%arg0: i32) -> (i32, i32) {
    %c0_i32 = arith.constant 0 : i32
    %c0_i32_0 = arith.constant 0 : i32
    %c0_i32_1 = arith.constant 0 : i32
    return %c0_i32, %c0_i32_0 : i32, i32
  }
  func.func @transform_4(%arg0: i32) -> (i32, i32) {
    %c0_i32 = arith.constant 0 : i32
    %c0_i32_0 = arith.constant 0 : i32
    %c0_i32_1 = arith.constant 0 : i32
    return %c0_i32, %c0_i32_0 : i32, i32
  }
  func.func @transform_5(%arg0: i32) -> (i32, i32) {
    %c0_i32 = arith.constant 0 : i32
    %c0_i32_0 = arith.constant 0 : i32
    return %arg0, %c0_i32 : i32, i32
  }
}

</mosaic_0001>

<bundles_post_ra>
// kernel: tpu_custom_call.1
= control target key start
LH: loop header
LB: loop body
LE: loop exit
PB: predicated region body
PF: predicated region fallthrough
CT: control target
= control target key end

     0   :  { %10 = vsyncpa [#allocation3], 0  ;;  %s1127_s0 = inlined_call_operand.hbm [shape: f32[16,16], index: 0, kind: input, shape index: {}]   ;;  %s1128_s1 = inlined_call_operand.hbm [shape: f32[16,32], index: 1, kind: input, shape index: {}]   ;;  %s1129_s2 = inlined_call_operand.vmem [shape: f32[1,32], index: 2, kind: input, shape index: {}]   ;;  %s1130_s3 = inlined_call_operand.hbm [shape: f32[32,48], index: 3, kind: input, shape index: {}]   ;;  %s1131_s4 = inlined_call_operand.vmem [shape: f32[1,48], index: 4, kind: input, shape index: {}]   ;;  %s1132_s5 = inlined_call_operand.hbm [shape: f32[16,48], index: 5, kind: output, shape index: {}]  }
   0x1   :  { %12 = vsyncpa [#allocation3 + $0x1], 0 }
   0x2   :  { %13 = vsyncpa [#allocation6], 0 }
   0x3   :  { %14 = vsyncpa [#allocation4], 0 }
   0x4   :  { %16 = vsyncpa [#allocation4 + $0x1], 0  ;;  %s888_s18 = smov 0   ;;  %s890_s19 = smov 0  }
   0x5   :  { %s892_s20 = smov 0   ;;  %s894_s21 = smov 0  }
   0x6 LB: > { %s909_s22 = sadd.s32 4294967295, %s847_s21   ;;  %s560_s23 = sadd.s32 4294967294, %s847_s21   ;;  %s847_s21 = sphi %s894_s21, %s1152_s21   ;;  %s843_s20 = sphi %s892_s20, %s1151_s20   ;;  %s839_s19 = sphi %s890_s19, %s1150_s19   ;;  %s835_s18 = sphi %s888_s18, %s1149_s18  }
   0x7   : > { %p42_p0 = scmp.ne.s32.totalorder %s839_s19, %s835_s18  ;;  %p1133_p1 = scmp.eq.s32.totalorder %s909_s22, 0 }
   0x8   : > { %p156_p3 = scmp.eq.s32.totalorder %s560_s23, 1  ;;  %p561_p5 = scmp.ge.s32.totalorder %s847_s21, 1 }
   0x9   : > { %p918_p4 = por %p1133_p1, %p42_p0  ;;  %p163_p7 = scmp.lt.s32.totalorder %s847_s21, 3 }
   0xa   : > { %p923_p6 = por %p156_p3, %p42_p0  ;;  %s849_s27 = smov [#allocation5]  }
   0xb   : > { %s1136_s24 = scalar_select %p918_p4, 1, 0 }
   0xc   : > { %s1137_s25 = scalar_select %p923_p6, 1, 0 }
   0xd   : > { %p928_p8 = pnand %p561_p5, %p163_p7  ;;  %s175_s28 = sshll.u32 %s849_s27, 4  ;;  %s932_s28 = int_to_ptr.vmem [resolvable:$true] %s175_s28 }
   0xe   : > { %s850_s30 = smov [#allocation7]   ;;  %s691_s9 = scalar_lea.hbm %s1128_s1, 256 }
   0xf   : > { %p627_p9 = pneg %p928_p8  ;;  %s191_s6 = sshll.u32 %s850_s30, 4  ;;  %s943_s6 = int_to_ptr.vmem [resolvable:$true] %s191_s6 }
  0x10   : > { %p692_p12 = scmp.ne.s32.totalorder %s1128_s1, %s691_s9  ;;  %p698_p5 = scmp.lt.u32.totalorder %s691_s9, %s1128_s1 }
  0x11   : > { %p939_p11 = pnand %p627_p9, %p1133_p1 }
  0x13   : > { %p693_p13 = pneg %p939_p11 }
  0x15   : > { %p694_p0 = pnand %p693_p13, %p692_p12 }
  0x17   : > { %p695_p3 = pneg %p694_p0 }
  0x19   : > { %p700_p7 = pnand %p698_p5, %p695_p3 }
  0x1b   : > { %703 = shalt.err (!%p700_p7)
}
  0x1c   : > { %s704_s14 = scalar_lea.vmem %s932_s28, 256  ;;  %p712_p2 = scmp.lt.s32.totalorder %s932_s28, %s932_s28 }
  0x1d   : > { %p705_p9 = scmp.ne.s32.totalorder %s932_s28, %s704_s14  ;;  %p713_p12 = scmp.lt.s32.totalorder %s704_s14, %s704_s14 }
  0x1f   : > { %p707_p10 = pnand %p705_p9, %p693_p13  ;;  %p714_p0 = por %p713_p12, %p712_p2 }
  0x21   : > { %p708_p1 = pneg %p707_p10 }
  0x23   : > { %p715_p6 = pnand %p714_p0, %p708_p1 }
  0x25   : > { %718 = shalt.err (!%p715_p6)
}
  0x26   : > { %s851_s15 = smov 128   ;;  %s852_s16 = smov 8  }
  0x27   : > { %630 = dma.hbm_to_vmem [thread:$0]  (!%p939_p11), %s1128_s1, 256, %s932_s28, [#allocation6], %s851_s15, %s851_s15, %s852_s16  }
  0x28   : > { %s719_s7 = scalar_lea.hbm %s1130_s3, 512 }
  0x29   : > { %p720_p2 = scmp.ne.s32.totalorder %s1130_s3, %s719_s7  ;;  %p726_p10 = scmp.lt.u32.totalorder %s719_s7, %s1130_s3 }
  0x2b   : > { %p722_p1 = pnand %p720_p2, %p693_p13 }
  0x2d   : > { %p723_p6 = pneg %p722_p1 }
  0x2f   : > { %p728_p3 = pnand %p726_p10, %p723_p6 }
  0x31   : > { %731 = shalt.err (!%p728_p3)
}
  0x32   : > { %s732_s28 = scalar_lea.vmem %s943_s6, 512  ;;  %p740_p12 = scmp.lt.s32.totalorder %s943_s6, %s943_s6 }
  0x33   : > { %p733_p5 = scmp.ne.s32.totalorder %s943_s6, %s732_s28  ;;  %p741_p0 = scmp.lt.s32.totalorder %s732_s28, %s732_s28 }
  0x35   : > { %p735_p7 = pnand %p733_p5, %p693_p13  ;;  %p742_p2 = por %p741_p0, %p740_p12 }
  0x37   : > { %p736_p9 = pneg %p735_p7 }
  0x39   : > { %p743_p1 = pnand %p742_p2, %p736_p9 }
  0x3b   : > { %746 = shalt.err (!%p743_p1)
}
  0x3c   : > { %633 = dma.hbm_to_vmem [thread:$0]  (!%p939_p11), %s1130_s3, 512, %s943_s6, [#allocation6], %s851_s15, %s851_s15, %s852_s16  }
  0x3d   : > { %s998_s14 = sadd.s32 1, %s847_s21   ;;  %s29_s29 = sadd.s32 1, %s843_s20 }
  0x3e   : > { %s26_s17 = ssub.s32 %s847_s21, %s998_s14  ;;  %p36_p13 = scmp.ne.s32.totalorder %s843_s20, %s839_s19 }
  0x3f   : > { %p27_p6 = scmp.eq.s32.totalorder %s26_s17, 0  ;;  %p37_p10 = scmp.eq.s32.totalorder %s847_s21, 0 }
  0x40   : > { %p1140_p3 = scmp.eq.s32.totalorder %s909_s22, 1  ;;  %p644_p7 = scmp.lt.s32.totalorder %s847_s21, 2 }
  0x41   : > { %s1014_s27 = scalar_select %p27_p6, %s843_s20, %s29_s29  }
  0x42   : > { %p1008_p5 = por %p1140_p3, %p36_p13  ;;  %p38_p9 = por %p37_p10, %p36_p13 }
  0x43   : > { %s208_s30 = sand.u32 1, %s843_s20   ;;  %s566_s6 = sshll.u32 %s847_s21, 7 }
  0x44   : > { %s1141_s23 = scalar_select %p1008_p5, 1, 0 }
  0x45   : > { %s565_s7 = sshll.u32 %s208_s30, 3  ;;  %s1021_s8 = scalar_lea.hbm %s1127_s0, %s566_s6 }
  0x46   : > { %s212_s9 = scalar_lea.vmem [#allocation2], %s565_s7  ;;  %p1025_p11 = pnand %p644_p7, %p38_p9 }
  0x47   : > { %s219_s10 = sshll.u32 %s212_s9, 4  ;;  %s209_s28 = scalar_lea.sflag [#allocation3], %s208_s30  ;;  %s1023_s10 = int_to_ptr.vmem [resolvable:$true] %s219_s10 }
  0x48   : > { %s747_s12 = scalar_lea.hbm %s1021_s8, 128  ;;  %p749_p0 = pneg %p1025_p11 }
  0x49   : > { %p748_p12 = scmp.ne.s32.totalorder %s1021_s8, %s747_s12  ;;  %s752_s17 = scalar_lea.hbm %s1127_s0, 256 }
  0x4a   : > { %p753_p13 = scmp.lt.u32.totalorder %s1021_s8, %s1127_s0  ;;  %p754_p6 = scmp.lt.u32.totalorder %s752_s17, %s747_s12 }
  0x4b   : > { %p750_p2 = pnand %p749_p0, %p748_p12  ;;  %p756_p3 = scmp.lt.u32.totalorder %s747_s12, %s1021_s8 }
  0x4c   : > { %p755_p10 = por %p754_p6, %p753_p13 }
  0x4d   : > { %p751_p1 = pneg %p750_p2 }
  0x4e   : > { %p757_p7 = por %p756_p3, %p755_p10 }
  0x50   : > { %p758_p9 = pnand %p757_p7, %p751_p1 }
  0x52   : > { %761 = shalt.err (!%p758_p9)
}
  0x53   : > { %s762_s30 = scalar_lea.vmem %s1023_s10, 128  ;;  %s853_s15 = smov [#allocation2]  }
  0x54   : > { %p763_p12 = scmp.ne.s32.totalorder %s1023_s10, %s762_s30  ;;  %s767_s16 = sshll.u32 %s853_s15, 4  ;;  %s768_s16 = int_to_ptr.vmem [resolvable:$false] %s767_s16 }
  0x55   : > { %s769_s9 = scalar_lea.vmem %s768_s16, 256  ;;  %p770_p4 = scmp.lt.s32.totalorder %s1023_s10, %s768_s16 }
  0x56   : > { %p765_p2 = pnand %p763_p12, %p749_p0  ;;  %p771_p13 = scmp.lt.s32.totalorder %s769_s9, %s762_s30 }
  0x58   : > { %p766_p5 = pneg %p765_p2  ;;  %p772_p6 = por %p771_p13, %p770_p4 }
  0x5a   : > { %p773_p10 = pnand %p772_p6, %p766_p5 }
  0x5c   : > { %776 = shalt.err (!%p773_p10)
}
  0x5d   : > { %637 = dma.hbm_to_vmem [thread:$0]  (!%p1025_p11), %s1021_s8, 128, %s1023_s10, %s209_s28  }
  0x5e   : > { %228 = sbr.rel (%p928_p8) target bundleno = 592 (0x250), region = 40  ;;  %s1057_s12 = sand.u32 (!%p928_p8), 1, %s839_s19  }
  0x5f   : > { %s568_s13 = sshll.u32 (!%p928_p8), %s1057_s12, 3  ;;  %s231_s29 = scalar_lea.sflag (!%p928_p8), [#allocation3], %s1057_s12 }
  0x60   : > { %s234_s17 = scalar_lea.vmem (!%p928_p8), [#allocation2], %s568_s13  ;;  %p1143_p4 = scmp.ne.s32.totalorder (!%p928_p8), %s1136_s24, 0 }
  0x65   : > { %822 = dma.done.wait (%p1143_p4), %s231_s29, 128  }
  0x66   : > { %824 = vsyncadd (%p1143_p4), %s231_s29, 4294967168  ;;  %p1144_p5 = scmp.eq.s32.totalorder %s909_s22, 0 }
  0x68   : > { %826 = dma.done.wait (%p1144_p5), [#allocation6], 768   ;;  %p1145_p8 = pmov %p1144_p5 }
  0x69   : > { %v854_v0 = vmov 0.0|0.0   ;;  %vm855_vm0 = vmmov 0   ;;  %v856_v1 = vmov 0.0   ;;  %v270_v2 = vld [vmem:[#allocation5] sm:$0xff]  ;;  %v271_v3 = vld [vmem:[#allocation5 + $0x8] sm:$0xff]  ;;  %v354_v5 = vld [vmem:[#allocation7] sm:$0xff] }
  0x6a   : > { %828 = vsyncadd (%p1145_p8), [#allocation6], 4294966528  ;;  %606 = vmatprep.subr.bf16.mxu0 %v854_v0  ;;  %592 = vmatprep.mubr.msk.f32.mxu0 %vm855_vm0, %v856_v1  ;;  %v607_v4 = vpack.c.bf16 %v271_v3, %v270_v2  ;;  %v355_v6 = vld [vmem:[#allocation7 + $0x8] sm:$0xff]  ;;  %vm279_vm1 = vcmask 130048   ;;  %v356_v9 = vld [vmem:[#allocation7 + $0x10] sm:$0xff]  ;;  %vm365_vm2 = vcmask 261120  }
  0x6b   : > { %609 = vmatprep.subr.bf16.mxu1 %v854_v0  ;;  %603 = vmatprep.mubr.msk.f32.mxu1 %vm855_vm0, %v856_v1  ;;  %v610_v7 = vpack.c.bf16 %v355_v6, %v354_v5  ;;  %v269_v8 = vld [vmem:[%s234_s17] sm:$0xff]  ;;  %v357_v10 = vld [vmem:[#allocation7 + $0x18] sm:$0xff]  ;;  %s577_s11 = sshll.u32 %s909_s22, 7  ;;  %s268_s28 = scalar_lea.vmem [#allocation8], %s568_s13  ;;  %vm455_vm4 = vcmask 392192  }
  0x6c   : > { %608 = vmatpush3.bf16.msra.mxu0 %v607_v4  ;;  %v613_v11 = vpack.c.bf16 %v357_v10, %v356_v9  ;;  %v572_v12 = vld [vmem:[%s1129_s2] ss:$0 sm:$0xff]  ;;  %s471_s7 = sshll.u32 %s268_s28, 4  ;;  %s1083_s15 = scalar_lea.hbm %s1132_s5, %s577_s11  ;;  %s1085_s7 = int_to_ptr.vmem [resolvable:$true] %s471_s7 }
  0x6d   : > { %611 = vmatpush3.bf16.msra.mxu1 %v610_v7  ;;  %v574_v17 = vld [vmem:[%s1131_s4] ss:$0 sm:$0xff]  ;;  %s458_s16 = scalar_lea.sflag [#allocation4], %s1057_s12  ;;  %s777_s9 = scalar_lea.vmem %s1085_s7, 128 }
  0x6e   : > { %612 = vmatprep.subr.bf16.mxu1 %v854_v0  ;;  %p778_p11 = scmp.ne.s32.totalorder %s1085_s7, %s777_s9  ;;  %p1146_p0 = scmp.ne.s32.totalorder %s1141_s23, 0 }
  0x6f   : > { %593 = vmatmul.mubr.msk.f32.vlgmr.msra.gmra.mrb[0].mxu0 %vm279_vm1, %v269_v8  ;;  %s857_s22 = smov [#allocation8]  }
  0x70   : > { %p779_p1 = pnand %p778_p11, %p1146_p0  ;;  %s781_s13 = sshll.u32 %s857_s22, 4  ;;  %s782_s13 = int_to_ptr.vmem [resolvable:$false] %s781_s13 }
  0x71   : > { %614 = vmatpush3.bf16.msra.mxu1 %v613_v11  ;;  %s783_s29 = scalar_lea.vmem %s782_s13, 256  ;;  %p784_p7 = scmp.lt.s32.totalorder %s1085_s7, %s782_s13 }
  0x72   : > { %p780_p3 = pneg %p779_p1  ;;  %p785_p9 = scmp.lt.s32.totalorder %s783_s29, %s777_s9 }
  0x74   : > { %p786_p12 = por %p785_p9, %p784_p7 }
  0x76   : > { %p787_p2 = pnand %p786_p12, %p780_p3 }
 0x142   : > { %v349_v13 = vpop.f32.mrb[0].mxu0 }
 0x143   : > { %v350_v14 = vadd.f32 %v572_v12, %v349_v13  ;;  %v594_v15 = vpop.f32.mrb[1].mxu0 }
 0x145   : > { %v353_v16 = vmax.f32 %v350_v14, 0.0 }
 0x147   : > { %604 = vmatmul.mubr.msk.f32.vlgmr.msra.gmra.mrb[0].mxu1 %vm365_vm2, %v353_v16 }
 0x21a   : > { %v435_v18 = vpop.f32.mrb[0].mxu1 }
 0x21b   : > { %v436_v19 = vadd.f32 %v574_v17, %v435_v18  ;;  %v605_v20 = vpop.f32.mrb[1].mxu1 }
 0x21d   : > { %v440_v21 = vand.u32 2147483647, %v436_v19  ;;  %v439_v32 = vmax.f32 %v436_v19, 0.0 }
 0x21f   : > { %v441_v22 = vsub.f32 0.0, %v440_v21 }
 0x221   : > { %v442_v23 = vmul.f32 1.442695, %v441_v22 }
 0x223   : > { %687 = vpow2.f32 %v442_v23 }
 0x22d   : > { %v688_v24 = vpop.eup %687 }
 0x22e   : > { %v444_v25 = vadd.f32 1.0, %v688_v24  ;;  %v447_v26 = vmul.f32 -0.5, %v688_v24  ;;  %v450_v28 = vand.u32 2147483647, %v688_v24 }
 0x230   : > { %689 = vlog2.f32 %v444_v25  ;;  %v448_v27 = vadd.f32 1.0, %v447_v26  ;;  %vm451_vm3 = vcmp.lt.f32.partialorder %v450_v28, 0.0004427343 }
 0x232   : > { %v449_v31 = vmul.f32 %v688_v24, %v448_v27 }
 0x23a   : > { %v690_v29 = vpop.eup %689 }
 0x23b   : > { %v446_v30 = vmul.f32 0.6931472, %v690_v29 }
 0x23d   : > { %v452_v33 = vsel %vm451_vm3, %v449_v31, %v446_v30 }
 0x23e   : > { %v453_v34 = vadd.f32 %v452_v33, %v439_v32 }
 0x240   : > { %v454_v35 = vadd.f32 0.001, %v453_v34 }
 0x242   : > { %456 = vst.msk [vmem:[%s268_s28] sm:$0xff] %vm455_vm4, %v454_v35 }
 0x243   : > { %790 = shalt.err (!%p787_p2)
}
 0x244   : > { %s791_s12 = scalar_lea.hbm %s1083_s15, 128  ;;  %s795_s26 = scalar_lea.hbm %s1132_s5, 256 }
 0x245   : > { %p792_p13 = scmp.ne.s32.totalorder %s1083_s15, %s791_s12  ;;  %p796_p4 = scmp.lt.u32.totalorder %s1083_s15, %s1132_s5 }
 0x246   : > { %p797_p5 = scmp.lt.u32.totalorder %s795_s26, %s791_s12  ;;  %p799_p11 = scmp.lt.u32.totalorder %s791_s12, %s1083_s15 }
 0x247   : > { %p793_p6 = pnand %p792_p13, %p1146_p0 }
 0x248   : > { %p798_p8 = por %p797_p5, %p796_p4 }
 0x249   : > { %p794_p10 = pneg %p793_p6 }
 0x24a   : > { %p800_p1 = por %p799_p11, %p798_p8 }
 0x24c   : > { %p801_p3 = pnand %p800_p1, %p794_p10 }
 0x24e   : > { %804 = shalt.err (!%p801_p3)
}
 0x24f   : > { %625 = dma.vmem_to_hbm [thread:$0]  (%p1146_p0), %s1085_s7, 128, %s1083_s15, %s458_s16  }
 0x250 PF: > { %s483_s11 = sand.u32 1, %s835_s18   ;;  %p1147_p7 = scmp.ne.s32.totalorder %s1137_s25, 0 }
 0x251   : > { %p1148_p9 = scmp.ge.s32.totalorder %s847_s21, 2  ;;  %s484_s28 = scalar_lea.sflag [#allocation4], %s483_s11 }
 0x253   : > { %p639_p12 = pnand %p1148_p9, %p1147_p7 }
 0x255   : > { %830 = dma.done.wait (!%p639_p12), %s484_s28, 128  }
 0x256   : > { %832 = vsyncadd (!%p639_p12), %s484_s28, 4294967168  ;;  %p19_p2 = scmp.ge.s32.totalorder %s998_s14, 4   ;;  %s1149_s18 = smov %s839_s19 }
 0x257   : > { %s1150_s19 = smov %s843_s20  ;;  %s1151_s20 = smov %s1014_s27 }
 0x258   : > { %s1152_s21 = smov %s998_s14  ;;  %21 = sbr.rel (!%p19_p2) target bundleno = 6 (0x6), region = 93 }
 0x25f   :  { %489 = vsyncpa [#allocation3], 1 }
 0x260   :  { %491 = vsyncpa [#allocation3 + $0x1], 1 }
 0x261   :  { %492 = vsyncpa [#allocation6], 1 }
 0x262   :  { %493 = vsyncpa [#allocation4], 1 }
 0x263   :  { %495 = vsyncpa [#allocation4 + $0x1], 1 }

// kernel: tpu_custom_call.1
= control target key start
LH: loop header
LB: loop body
LE: loop exit
PB: predicated region body
PF: predicated region fallthrough
CT: control target
= control target key end

     0   :  { %10 = vsyncpa [#allocation3], 0  ;;  %s1127_s0 = inlined_call_operand.hbm [shape: f32[16,16], index: 0, kind: input, shape index: {}]   ;;  %s1128_s1 = inlined_call_operand.hbm [shape: f32[16,32], index: 1, kind: input, shape index: {}]   ;;  %s1129_s2 = inlined_call_operand.vmem [shape: f32[1,32], index: 2, kind: input, shape index: {}]   ;;  %s1130_s3 = inlined_call_operand.hbm [shape: f32[32,48], index: 3, kind: input, shape index: {}]   ;;  %s1131_s4 = inlined_call_operand.vmem [shape: f32[1,48], index: 4, kind: input, shape index: {}]   ;;  %s1132_s5 = inlined_call_operand.hbm [shape: f32[16,48], index: 5, kind: output, shape index: {}]  }
   0x1   :  { %12 = vsyncpa [#allocation3 + $0x1], 0 }
   0x2   :  { %13 = vsyncpa [#allocation6], 0 }
   0x3   :  { %14 = vsyncpa [#allocation4], 0 }
   0x4   :  { %16 = vsyncpa [#allocation4 + $0x1], 0  ;;  %s888_s18 = smov 0   ;;  %s890_s19 = smov 0  }
   0x5   :  { %s892_s20 = smov 0   ;;  %s894_s21 = smov 0  }
   0x6 LB: > { %s909_s22 = sadd.s32 4294967295, %s847_s21   ;;  %s560_s23 = sadd.s32 4294967294, %s847_s21   ;;  %s847_s21 = sphi %s894_s21, %s1152_s21   ;;  %s843_s20 = sphi %s892_s20, %s1151_s20   ;;  %s839_s19 = sphi %s890_s19, %s1150_s19   ;;  %s835_s18 = sphi %s888_s18, %s1149_s18  }
   0x7   : > { %p42_p0 = scmp.ne.s32.totalorder %s839_s19, %s835_s18  ;;  %p1133_p1 = scmp.eq.s32.totalorder %s909_s22, 0 }
   0x8   : > { %p156_p3 = scmp.eq.s32.totalorder %s560_s23, 1  ;;  %p561_p5 = scmp.ge.s32.totalorder %s847_s21, 1 }
   0x9   : > { %p918_p4 = por %p1133_p1, %p42_p0  ;;  %p163_p7 = scmp.lt.s32.totalorder %s847_s21, 3 }
   0xa   : > { %p923_p6 = por %p156_p3, %p42_p0  ;;  %s849_s27 = smov [#allocation5]  }
   0xb   : > { %s1136_s24 = scalar_select %p918_p4, 1, 0 }
   0xc   : > { %s1137_s25 = scalar_select %p923_p6, 1, 0 }
   0xd   : > { %p928_p8 = pnand %p561_p5, %p163_p7  ;;  %s175_s28 = sshll.u32 %s849_s27, 4  ;;  %s932_s28 = int_to_ptr.vmem [resolvable:$true] %s175_s28 }
   0xe   : > { %s850_s30 = smov [#allocation7]   ;;  %s691_s9 = scalar_lea.hbm %s1128_s1, 256 }
   0xf   : > { %p627_p9 = pneg %p928_p8  ;;  %s191_s6 = sshll.u32 %s850_s30, 4  ;;  %s943_s6 = int_to_ptr.vmem [resolvable:$true] %s191_s6 }
  0x10   : > { %p692_p12 = scmp.ne.s32.totalorder %s1128_s1, %s691_s9  ;;  %p698_p5 = scmp.lt.u32.totalorder %s691_s9, %s1128_s1 }
  0x11   : > { %p939_p11 = pnand %p627_p9, %p1133_p1 }
  0x13   : > { %p693_p13 = pneg %p939_p11 }
  0x15   : > { %p694_p0 = pnand %p693_p13, %p692_p12 }
  0x17   : > { %p695_p3 = pneg %p694_p0 }
  0x19   : > { %p700_p7 = pnand %p698_p5, %p695_p3 }
  0x1b   : > { %703 = shalt.err (!%p700_p7)
}
  0x1c   : > { %s704_s14 = scalar_lea.vmem %s932_s28, 256  ;;  %p712_p2 = scmp.lt.s32.totalorder %s932_s28, %s932_s28 }
  0x1d   : > { %p705_p9 = scmp.ne.s32.totalorder %s932_s28, %s704_s14  ;;  %p713_p12 = scmp.lt.s32.totalorder %s704_s14, %s704_s14 }
  0x1f   : > { %p707_p10 = pnand %p705_p9, %p693_p13  ;;  %p714_p0 = por %p713_p12, %p712_p2 }
  0x21   : > { %p708_p1 = pneg %p707_p10 }
  0x23   : > { %p715_p6 = pnand %p714_p0, %p708_p1 }
  0x25   : > { %718 = shalt.err (!%p715_p6)
}
  0x26   : > { %s851_s15 = smov 128   ;;  %s852_s16 = smov 8  }
  0x27   : > { %630 = dma.hbm_to_vmem [thread:$0]  (!%p939_p11), %s1128_s1, 256, %s932_s28, [#allocation6], %s851_s15, %s851_s15, %s852_s16  }
  0x28   : > { %s719_s7 = scalar_lea.hbm %s1130_s3, 512 }
  0x29   : > { %p720_p2 = scmp.ne.s32.totalorder %s1130_s3, %s719_s7  ;;  %p726_p10 = scmp.lt.u32.totalorder %s719_s7, %s1130_s3 }
  0x2b   : > { %p722_p1 = pnand %p720_p2, %p693_p13 }
  0x2d   : > { %p723_p6 = pneg %p722_p1 }
  0x2f   : > { %p728_p3 = pnand %p726_p10, %p723_p6 }
  0x31   : > { %731 = shalt.err (!%p728_p3)
}
  0x32   : > { %s732_s28 = scalar_lea.vmem %s943_s6, 512  ;;  %p740_p12 = scmp.lt.s32.totalorder %s943_s6, %s943_s6 }
  0x33   : > { %p733_p5 = scmp.ne.s32.totalorder %s943_s6, %s732_s28  ;;  %p741_p0 = scmp.lt.s32.totalorder %s732_s28, %s732_s28 }
  0x35   : > { %p735_p7 = pnand %p733_p5, %p693_p13  ;;  %p742_p2 = por %p741_p0, %p740_p12 }
  0x37   : > { %p736_p9 = pneg %p735_p7 }
  0x39   : > { %p743_p1 = pnand %p742_p2, %p736_p9 }
  0x3b   : > { %746 = shalt.err (!%p743_p1)
}
  0x3c   : > { %633 = dma.hbm_to_vmem [thread:$0]  (!%p939_p11), %s1130_s3, 512, %s943_s6, [#allocation6], %s851_s15, %s851_s15, %s852_s16  }
  0x3d   : > { %s998_s14 = sadd.s32 1, %s847_s21   ;;  %s29_s29 = sadd.s32 1, %s843_s20 }
  0x3e   : > { %s26_s17 = ssub.s32 %s847_s21, %s998_s14  ;;  %p36_p13 = scmp.ne.s32.totalorder %s843_s20, %s839_s19 }
  0x3f   : > { %p27_p6 = scmp.eq.s32.totalorder %s26_s17, 0  ;;  %p37_p10 = scmp.eq.s32.totalorder %s847_s21, 0 }
  0x40   : > { %p1140_p3 = scmp.eq.s32.totalorder %s909_s22, 1  ;;  %p644_p7 = scmp.lt.s32.totalorder %s847_s21, 2 }
  0x41   : > { %s1014_s27 = scalar_select %p27_p6, %s843_s20, %s29_s29  }
  0x42   : > { %p1008_p5 = por %p1140_p3, %p36_p13  ;;  %p38_p9 = por %p37_p10, %p36_p13 }
  0x43   : > { %s208_s30 = sand.u32 1, %s843_s20   ;;  %s566_s6 = sshll.u32 %s847_s21, 7 }
  0x44   : > { %s1141_s23 = scalar_select %p1008_p5, 1, 0 }
  0x45   : > { %s565_s7 = sshll.u32 %s208_s30, 3  ;;  %s1021_s8 = scalar_lea.hbm %s1127_s0, %s566_s6 }
  0x46   : > { %s212_s9 = scalar_lea.vmem [#allocation2], %s565_s7  ;;  %p1025_p11 = pnand %p644_p7, %p38_p9 }
  0x47   : > { %s219_s10 = sshll.u32 %s212_s9, 4  ;;  %s209_s28 = scalar_lea.sflag [#allocation3], %s208_s30  ;;  %s1023_s10 = int_to_ptr.vmem [resolvable:$true] %s219_s10 }
  0x48   : > { %s747_s12 = scalar_lea.hbm %s1021_s8, 128  ;;  %p749_p0 = pneg %p1025_p11 }
  0x49   : > { %p748_p12 = scmp.ne.s32.totalorder %s1021_s8, %s747_s12  ;;  %s752_s17 = scalar_lea.hbm %s1127_s0, 256 }
  0x4a   : > { %p753_p13 = scmp.lt.u32.totalorder %s1021_s8, %s1127_s0  ;;  %p754_p6 = scmp.lt.u32.totalorder %s752_s17, %s747_s12 }
  0x4b   : > { %p750_p2 = pnand %p749_p0, %p748_p12  ;;  %p756_p3 = scmp.lt.u32.totalorder %s747_s12, %s1021_s8 }
  0x4c   : > { %p755_p10 = por %p754_p6, %p753_p13 }
  0x4d   : > { %p751_p1 = pneg %p750_p2 }
  0x4e   : > { %p757_p7 = por %p756_p3, %p755_p10 }
  0x50   : > { %p758_p9 = pnand %p757_p7, %p751_p1 }
  0x52   : > { %761 = shalt.err (!%p758_p9)
}
  0x53   : > { %s762_s30 = scalar_lea.vmem %s1023_s10, 128  ;;  %s853_s15 = smov [#allocation2]  }
  0x54   : > { %p763_p12 = scmp.ne.s32.totalorder %s1023_s10, %s762_s30  ;;  %s767_s16 = sshll.u32 %s853_s15, 4  ;;  %s768_s16 = int_to_ptr.vmem [resolvable:$false] %s767_s16 }
  0x55   : > { %s769_s9 = scalar_lea.vmem %s768_s16, 256  ;;  %p770_p4 = scmp.lt.s32.totalorder %s1023_s10, %s768_s16 }
  0x56   : > { %p765_p2 = pnand %p763_p12, %p749_p0  ;;  %p771_p13 = scmp.lt.s32.totalorder %s769_s9, %s762_s30 }
  0x58   : > { %p766_p5 = pneg %p765_p2  ;;  %p772_p6 = por %p771_p13, %p770_p4 }
  0x5a   : > { %p773_p10 = pnand %p772_p6, %p766_p5 }
  0x5c   : > { %776 = shalt.err (!%p773_p10)
}
  0x5d   : > { %637 = dma.hbm_to_vmem [thread:$0]  (!%p1025_p11), %s1021_s8, 128, %s1023_s10, %s209_s28  }
  0x5e   : > { %228 = sbr.rel (%p928_p8) target bundleno = 592 (0x250), region = 40  ;;  %s1057_s12 = sand.u32 (!%p928_p8), 1, %s839_s19  }
  0x5f   : > { %s568_s13 = sshll.u32 (!%p928_p8), %s1057_s12, 3  ;;  %s231_s29 = scalar_lea.sflag (!%p928_p8), [#allocation3], %s1057_s12 }
  0x60   : > { %s234_s17 = scalar_lea.vmem (!%p928_p8), [#allocation2], %s568_s13  ;;  %p1143_p4 = scmp.ne.s32.totalorder (!%p928_p8), %s1136_s24, 0 }
  0x65   : > { %822 = dma.done.wait (%p1143_p4), %s231_s29, 128  }
  0x66   : > { %824 = vsyncadd (%p1143_p4), %s231_s29, 4294967168  ;;  %p1144_p5 = scmp.eq.s32.totalorder %s909_s22, 0 }
  0x68   : > { %826 = dma.done.wait (%p1144_p5), [#allocation6], 768   ;;  %p1145_p8 = pmov %p1144_p5 }
  0x69   : > { %v854_v0 = vmov 0.0|0.0   ;;  %vm855_vm0 = vmmov 0   ;;  %v856_v1 = vmov 0.0   ;;  %v270_v2 = vld [vmem:[#allocation5] sm:$0xff]  ;;  %v271_v3 = vld [vmem:[#allocation5 + $0x8] sm:$0xff]  ;;  %v354_v5 = vld [vmem:[#allocation7] sm:$0xff] }
  0x6a   : > { %828 = vsyncadd (%p1145_p8), [#allocation6], 4294966528  ;;  %606 = vmatprep.subr.bf16.mxu0 %v854_v0  ;;  %592 = vmatprep.mubr.msk.f32.mxu0 %vm855_vm0, %v856_v1  ;;  %v607_v4 = vpack.c.bf16 %v271_v3, %v270_v2  ;;  %v355_v6 = vld [vmem:[#allocation7 + $0x8] sm:$0xff]  ;;  %vm279_vm1 = vcmask 130048   ;;  %v356_v9 = vld [vmem:[#allocation7 + $0x10] sm:$0xff]  ;;  %vm365_vm2 = vcmask 261120  }
  0x6b   : > { %609 = vmatprep.subr.bf16.mxu1 %v854_v0  ;;  %603 = vmatprep.mubr.msk.f32.mxu1 %vm855_vm0, %v856_v1  ;;  %v610_v7 = vpack.c.bf16 %v355_v6, %v354_v5  ;;  %v269_v8 = vld [vmem:[%s234_s17] sm:$0xff]  ;;  %v357_v10 = vld [vmem:[#allocation7 + $0x18] sm:$0xff]  ;;  %s577_s11 = sshll.u32 %s909_s22, 7  ;;  %s268_s28 = scalar_lea.vmem [#allocation8], %s568_s13  ;;  %vm455_vm4 = vcmask 392192  }
  0x6c   : > { %608 = vmatpush3.bf16.msra.mxu0 %v607_v4  ;;  %v613_v11 = vpack.c.bf16 %v357_v10, %v356_v9  ;;  %v572_v12 = vld [vmem:[%s1129_s2] ss:$0 sm:$0xff]  ;;  %s471_s7 = sshll.u32 %s268_s28, 4  ;;  %s1083_s15 = scalar_lea.hbm %s1132_s5, %s577_s11  ;;  %s1085_s7 = int_to_ptr.vmem [resolvable:$true] %s471_s7 }
  0x6d   : > { %611 = vmatpush3.bf16.msra.mxu1 %v610_v7  ;;  %v574_v17 = vld [vmem:[%s1131_s4] ss:$0 sm:$0xff]  ;;  %s458_s16 = scalar_lea.sflag [#allocation4], %s1057_s12  ;;  %s777_s9 = scalar_lea.vmem %s1085_s7, 128 }
  0x6e   : > { %612 = vmatprep.subr.bf16.mxu1 %v854_v0  ;;  %p778_p11 = scmp.ne.s32.totalorder %s1085_s7, %s777_s9  ;;  %p1146_p0 = scmp.ne.s32.totalorder %s1141_s23, 0 }
  0x6f   : > { %593 = vmatmul.mubr.msk.f32.vlgmr.msra.gmra.mrb[0].mxu0 %vm279_vm1, %v269_v8  ;;  %s857_s22 = smov [#allocation8]  }
  0x70   : > { %p779_p1 = pnand %p778_p11, %p1146_p0  ;;  %s781_s13 = sshll.u32 %s857_s22, 4  ;;  %s782_s13 = int_to_ptr.vmem [resolvable:$false] %s781_s13 }
  0x71   : > { %614 = vmatpush3.bf16.msra.mxu1 %v613_v11  ;;  %s783_s29 = scalar_lea.vmem %s782_s13, 256  ;;  %p784_p7 = scmp.lt.s32.totalorder %s1085_s7, %s782_s13 }
  0x72   : > { %p780_p3 = pneg %p779_p1  ;;  %p785_p9 = scmp.lt.s32.totalorder %s783_s29, %s777_s9 }
  0x74   : > { %p786_p12 = por %p785_p9, %p784_p7 }
  0x76   : > { %p787_p2 = pnand %p786_p12, %p780_p3 }
 0x142   : > { %v349_v13 = vpop.f32.mrb[0].mxu0 }
 0x143   : > { %v350_v14 = vadd.f32 %v572_v12, %v349_v13  ;;  %v594_v15 = vpop.f32.mrb[1].mxu0 }
 0x145   : > { %v353_v16 = vmax.f32 %v350_v14, 0.0 }
 0x147   : > { %604 = vmatmul.mubr.msk.f32.vlgmr.msra.gmra.mrb[0].mxu1 %vm365_vm2, %v353_v16 }
 0x21a   : > { %v435_v18 = vpop.f32.mrb[0].mxu1 }
 0x21b   : > { %v436_v19 = vadd.f32 %v574_v17, %v435_v18  ;;  %v605_v20 = vpop.f32.mrb[1].mxu1 }
 0x21d   : > { %v440_v21 = vand.u32 2147483647, %v436_v19  ;;  %v439_v32 = vmax.f32 %v436_v19, 0.0 }
 0x21f   : > { %v441_v22 = vsub.f32 0.0, %v440_v21 }
 0x221   : > { %v442_v23 = vmul.f32 1.442695, %v441_v22 }
 0x223   : > { %687 = vpow2.f32 %v442_v23 }
 0x22d   : > { %v688_v24 = vpop.eup %687 }
 0x22e   : > { %v444_v25 = vadd.f32 1.0, %v688_v24  ;;  %v447_v26 = vmul.f32 -0.5, %v688_v24  ;;  %v450_v28 = vand.u32 2147483647, %v688_v24 }
 0x230   : > { %689 = vlog2.f32 %v444_v25  ;;  %v448_v27 = vadd.f32 1.0, %v447_v26  ;;  %vm451_vm3 = vcmp.lt.f32.partialorder %v450_v28, 0.0004427343 }
 0x232   : > { %v449_v31 = vmul.f32 %v688_v24, %v448_v27 }
 0x23a   : > { %v690_v29 = vpop.eup %689 }
 0x23b   : > { %v446_v30 = vmul.f32 0.6931472, %v690_v29 }
 0x23d   : > { %v452_v33 = vsel %vm451_vm3, %v449_v31, %v446_v30 }
 0x23e   : > { %v453_v34 = vadd.f32 %v452_v33, %v439_v32 }
 0x240   : > { %v454_v35 = vadd.f32 0.001, %v453_v34 }
 0x242   : > { %456 = vst.msk [vmem:[%s268_s28] sm:$0xff] %vm455_vm4, %v454_v35 }
 0x243   : > { %790 = shalt.err (!%p787_p2)
}
 0x244   : > { %s791_s12 = scalar_lea.hbm %s1083_s15, 128  ;;  %s795_s26 = scalar_lea.hbm %s1132_s5, 256 }
 0x245   : > { %p792_p13 = scmp.ne.s32.totalorder %s1083_s15, %s791_s12  ;;  %p796_p4 = scmp.lt.u32.totalorder %s1083_s15, %s1132_s5 }
 0x246   : > { %p797_p5 = scmp.lt.u32.totalorder %s795_s26, %s791_s12  ;;  %p799_p11 = scmp.lt.u32.totalorder %s791_s12, %s1083_s15 }
 0x247   : > { %p793_p6 = pnand %p792_p13, %p1146_p0 }
 0x248   : > { %p798_p8 = por %p797_p5, %p796_p4 }
 0x249   : > { %p794_p10 = pneg %p793_p6 }
 0x24a   : > { %p800_p1 = por %p799_p11, %p798_p8 }
 0x24c   : > { %p801_p3 = pnand %p800_p1, %p794_p10 }
 0x24e   : > { %804 = shalt.err (!%p801_p3)
}
 0x24f   : > { %625 = dma.vmem_to_hbm [thread:$0]  (%p1146_p0), %s1085_s7, 128, %s1083_s15, %s458_s16  }
 0x250 PF: > { %s483_s11 = sand.u32 1, %s835_s18   ;;  %p1147_p7 = scmp.ne.s32.totalorder %s1137_s25, 0 }
 0x251   : > { %p1148_p9 = scmp.ge.s32.totalorder %s847_s21, 2  ;;  %s484_s28 = scalar_lea.sflag [#allocation4], %s483_s11 }
 0x253   : > { %p639_p12 = pnand %p1148_p9, %p1147_p7 }
 0x255   : > { %830 = dma.done.wait (!%p639_p12), %s484_s28, 128  }
 0x256   : > { %832 = vsyncadd (!%p639_p12), %s484_s28, 4294967168  ;;  %p19_p2 = scmp.ge.s32.totalorder %s998_s14, 4   ;;  %s1149_s18 = smov %s839_s19 }
 0x257   : > { %s1150_s19 = smov %s843_s20  ;;  %s1151_s20 = smov %s1014_s27 }
 0x258   : > { %s1152_s21 = smov %s998_s14  ;;  %21 = sbr.rel (!%p19_p2) target bundleno = 6 (0x6), region = 93 }
 0x25f   :  { %489 = vsyncpa [#allocation3], 1 }
 0x260   :  { %491 = vsyncpa [#allocation3 + $0x1], 1 }
 0x261   :  { %492 = vsyncpa [#allocation6], 1 }
 0x262   :  { %493 = vsyncpa [#allocation4], 1 }
 0x263   :  { %495 = vsyncpa [#allocation4 + $0x1], 1 }

</bundles_post_ra>
